<compile_context>
chip_gen: v7x
topology: tpu7x:2x2x1
jax: 0.10.0
libtpu: 0.0.40
codegen_flags: <defaults>
</compile_context>

<pallas_src>
import functools

import jax
import jax.numpy as jnp
from jax.experimental import pallas as pl
from jax.experimental.pallas import tpu as pltpu

LANE = 128
MAX_BLOCK_ROWS = 512  # 512 x 1024 f32 = 2 MiB per block per input


def _fold_to_sublanes(v, width):
    """Reduce a (r, width) f32 block to an (8, width) partial sum (VPU adds)."""
    r = v.shape[0]
    if r >= 8 and r % 8 == 0:
        # Sublane-group split: rows stay within their (8,128) tiles -> no data
        # movement; sum over the leading axis is pure elementwise vector adds.
        return v.reshape(r // 8, 8, width).sum(axis=0)
    # Tiny-block fallback (whole problem is a single small block).
    part = jnp.sum(v, axis=0, keepdims=True)  # (1, width)
    sub = jax.lax.broadcasted_iota(jnp.int32, (8, width), 0)
    return jnp.where(sub == 0, part, jnp.zeros_like(part))


def _dice_kernel(x_ref, t_ref, out_ref, acc_ref, *,
                 alpha, n_valid, rows_total, block_rows, width, need_mask):
    i = pl.program_id(0)

    @pl.when(i == 0)
    def _init():
        acc_ref[...] = jnp.zeros_like(acc_ref)

    x = x_ref[...].astype(jnp.float32)
    t = t_ref[...].astype(jnp.float32)
    s = jax.nn.sigmoid(x)

    if need_mask:
        # Mask out-of-range (garbage / padded) elements of the last block.
        row = jax.lax.broadcasted_iota(jnp.int32, (block_rows, width), 0)
        grow = i * block_rows + row
        if rows_total * width == n_valid:
            valid = grow < rows_total          # only ragged rows
        else:
            lane = jax.lax.broadcasted_iota(jnp.int32, (block_rows, width), 1)
            valid = grow * width + lane < n_valid
        zero = jnp.zeros_like(s)
        s = jnp.where(valid, s, zero)
        t = jnp.where(valid, t, zero)

    st = s * t

    acc_ref[0] += _fold_to_sublanes(st, width)  # sum(sigmoid(x) * t)
    acc_ref[1] += _fold_to_sublanes(s, width)   # sum(sigmoid(x))
    acc_ref[2] += _fold_to_sublanes(t, width)   # sum(t)

    @pl.when(i == pl.num_programs(0) - 1)
    def _finalize():
        numerator = jnp.sum(acc_ref[0])
        denominator = jnp.sum(acc_ref[1]) + jnp.sum(acc_ref[2])
        dice = (2.0 * numerator + alpha) / (denominator + alpha)
        out_ref[0, 0] = 1.0 - dice


def _pick_width(n):
    for w in (1024, 512, 256, 128):
        if n % w == 0:
            return w
    return None


def dice_loss_with_logits(inputs, targets, alpha=1.0):
    assert inputs.shape == targets.shape
    n = int(inputs.size)

    # Keep native dtypes; only flatten (free for contiguous arrays).
    x = inputs.reshape(-1)
    t = targets.reshape(-1)

    w = _pick_width(n)
    if w is None:
        # Rare fallback: element count not a multiple of 128.  Pad the tail
        # with zeros; the kernel masks padded elements by flat index, so the
        # pad values never enter the sums.
        w = LANE
        pad = (-n) % w
        x = jnp.concatenate([x, jnp.zeros((pad,), x.dtype)])
        t = jnp.concatenate([t, jnp.zeros((pad,), t.dtype)])

    rows = int(x.size) // w
    x2 = x.reshape(rows, w)
    t2 = t.reshape(rows, w)

    # Block: (min(512, rows), w).  If rows < 512 the block equals the full
    # first dim (allowed even when not a multiple of 8).
    block_rows = min(MAX_BLOCK_ROWS, rows)
    grid = (pl.cdiv(rows, block_rows),)
    need_mask = (rows % block_rows != 0) or (rows * w != n)

    kernel = functools.partial(
        _dice_kernel,
        alpha=float(alpha),
        n_valid=n,
        rows_total=rows,
        block_rows=block_rows,
        width=w,
        need_mask=need_mask,
    )

    out = pl.pallas_call(
        kernel,
        out_shape=jax.ShapeDtypeStruct((1, 1), jnp.float32),
        grid_spec=pltpu.PrefetchScalarGridSpec(
            num_scalar_prefetch=0,
            grid=grid,
            in_specs=[
                pl.BlockSpec((block_rows, w), lambda i: (i, 0)),
                pl.BlockSpec((block_rows, w), lambda i: (i, 0)),
            ],
            out_specs=pl.BlockSpec(memory_space=pltpu.MemorySpace.SMEM),
            scratch_shapes=[pltpu.VMEM((3, 8, w), jnp.float32)],
        ),
        compiler_params=pltpu.CompilerParams(
            # Reduction axis carries the VMEM accumulator -> must be sequential.
            dimension_semantics=("arbitrary",),
            vmem_limit_bytes=32 * 1024 * 1024,
        ),
    )(x2, t2)
    return out[0, 0]


def _reference(inputs, targets, alpha=1.0):
    s = jax.nn.sigmoid(inputs.astype(jnp.float32))
    t = targets.astype(jnp.float32)
    numerator = jnp.sum(s * t)
    denominator = jnp.sum(s) + jnp.sum(t)
    dice = (2.0 * numerator + alpha) / (denominator + alpha)
    return 1.0 - dice


if __name__ == "__main__":
    key = jax.random.PRNGKey(0)
    k1, k2 = jax.random.split(key)

    # NCHW, same convention as the PyTorch module's typical use.
    shape = (2, 4, 16, 16)
    logits = jax.random.normal(k1, shape, dtype=jnp.float32)
    targets = jax.random.bernoulli(k2, 0.5, shape).astype(jnp.float32)

    loss = dice_loss_with_logits(logits, targets, alpha=1.0)
    loss = jax.block_until_ready(loss)

    ref = _reference(logits, targets, alpha=1.0)
    assert jnp.allclose(loss, ref, atol=1e-5, rtol=1e-5), (loss, ref)

    print("KERNEL_OK")
</pallas_src>

<mosaic_0001>
module attributes {stable_mosaic.version = 11 : i64} {
  func.func @_dice_kernel(%arg0: i32, %arg1: memref<2x1024xf32, #tpu.memory_space<vmem>>, %arg2: memref<2x1024xf32, #tpu.memory_space<vmem>>, %arg3: memref<1x1xf32, #tpu.memory_space<smem>>, %arg4: memref<3x8x1024xf32, #tpu.memory_space<vmem>>) attributes {dimension_semantics = [#tpu.dimension_semantics<arbitrary>], iteration_bounds = array<i64: 1>, scalar_prefetch = 0 : i64, scratch_operands = 1 : i64, tpu.core_type = #tpu.core_type<tc>, window_params = [{transform_indices = @transform_0, window_bounds = array<i64: 2, 1024>}, {transform_indices = @transform_1, window_bounds = array<i64: 2, 1024>}, {transform_indices = @transform_2, window_bounds = array<i64: 1, 1>}]} {
    %c0_i32 = arith.constant 0 : i32
    %0 = arith.cmpi eq, %arg0, %c0_i32 : i32
    %1 = arith.extui %0 : i1 to i32
    %c0_i32_0 = arith.constant 0 : i32
    %2 = arith.cmpi ne, %1, %c0_i32_0 : i32
    scf.if %2 {
      %cst_31 = arith.constant 0.000000e+00 : f32
      %65 = vector.broadcast %cst_31 : f32 to vector<3x8x1024xf32>
      %c0_32 = arith.constant 0 : index
      %c0_33 = arith.constant 0 : index
      %c0_34 = arith.constant 0 : index
      %66 = vector.load %arg4[%c0_32, %c0_33, %c0_34] : memref<3x8x1024xf32, #tpu.memory_space<vmem>>, vector<3x8x1024xf32>
      tpu.vector_store %arg4[%c0_32, %c0_33, %c0_34], %65 {strides = array<i32>} : memref<3x8x1024xf32, #tpu.memory_space<vmem>>, vector<3x8x1024xf32>,
    } else {
    }
    %c0 = arith.constant 0 : index
    %c0_1 = arith.constant 0 : index
    %3 = vector.load %arg1[%c0, %c0_1] : memref<2x1024xf32, #tpu.memory_space<vmem>>, vector<2x1024xf32>
    %c0_2 = arith.constant 0 : index
    %c0_3 = arith.constant 0 : index
    %4 = vector.load %arg2[%c0_2, %c0_3] : memref<2x1024xf32, #tpu.memory_space<vmem>>, vector<2x1024xf32>
    %5 = arith.negf %3 : vector<2x1024xf32>
    %6 = math.exp %5 : vector<2x1024xf32>
    %cst = arith.constant 1.000000e+00 : f32
    %7 = vector.broadcast %cst : f32 to vector<2x1024xf32>
    %8 = arith.addf %7, %6 : vector<2x1024xf32>
    %9 = arith.divf %7, %8 : vector<2x1024xf32>
    %10 = arith.mulf %9, %4 : vector<2x1024xf32>
    %c0_4 = arith.constant 0 : index
    %c0_5 = arith.constant 0 : index
    %c0_6 = arith.constant 0 : index
    %11 = vector.load %arg4[%c0_4, %c0_5, %c0_6] : memref<3x8x1024xf32, #tpu.memory_space<vmem>>, vector<1x8x1024xf32>
    %12 = vector.shape_cast %11 : vector<1x8x1024xf32> to vector<8x1024xf32>
    %cst_7 = arith.constant dense<0.000000e+00> : vector<1024xf32>
    %13 = vector.multi_reduction <add>, %10, %cst_7 [0] : vector<2x1024xf32> to vector<1024xf32>
    %14 = vector.shape_cast %13 : vector<1024xf32> to vector<1x1024xf32>
    %15 = tpu.iota {dimensions = array<i32: 0>} : vector<8x1024xi32>
    %c0_i32_8 = arith.constant 0 : i32
    %16 = vector.broadcast %c0_i32_8 : i32 to vector<8x1024xi32>
    %17 = arith.cmpi eq, %15, %16 : vector<8x1024xi32>
    %cst_9 = arith.constant 0.000000e+00 : f32
    %18 = vector.broadcast %cst_9 : f32 to vector<1x1024xf32>
    %19 = vector.shape_cast %14 : vector<1x1024xf32> to vector<1x1024xf32>
    %20 = vector.broadcast %19 : vector<1x1024xf32> to vector<8x1024xf32>
    %21 = vector.shape_cast %18 : vector<1x1024xf32> to vector<1x1024xf32>
    %22 = vector.broadcast %21 : vector<1x1024xf32> to vector<8x1024xf32>
    %23 = arith.select %17, %20, %22 : vector<8x1024xi1>, vector<8x1024xf32>
    %24 = arith.addf %12, %23 : vector<8x1024xf32>
    %c0_10 = arith.constant 0 : index
    %c0_11 = arith.constant 0 : index
    %c0_12 = arith.constant 0 : index
    %25 = vector.load %arg4[%c0_10, %c0_11, %c0_12] : memref<3x8x1024xf32, #tpu.memory_space<vmem>>, vector<1x8x1024xf32>
    %26 = vector.shape_cast %25 : vector<1x8x1024xf32> to vector<8x1024xf32>
    %27 = vector.shape_cast %24 : vector<8x1024xf32> to vector<1x8x1024xf32>
    tpu.vector_store %arg4[%c0_10, %c0_11, %c0_12], %27 {strides = array<i32>} : memref<3x8x1024xf32, #tpu.memory_space<vmem>>, vector<1x8x1024xf32>,
    %c1 = arith.constant 1 : index
    %c0_13 = arith.constant 0 : index
    %c0_14 = arith.constant 0 : index
    %28 = vector.load %arg4[%c1, %c0_13, %c0_14] : memref<3x8x1024xf32, #tpu.memory_space<vmem>>, vector<1x8x1024xf32>
    %29 = vector.shape_cast %28 : vector<1x8x1024xf32> to vector<8x1024xf32>
    %cst_15 = arith.constant dense<0.000000e+00> : vector<1024xf32>
    %30 = vector.multi_reduction <add>, %9, %cst_15 [0] : vector<2x1024xf32> to vector<1024xf32>
    %31 = vector.shape_cast %30 : vector<1024xf32> to vector<1x1024xf32>
    %32 = tpu.iota {dimensions = array<i32: 0>} : vector<8x1024xi32>
    %c0_i32_16 = arith.constant 0 : i32
    %33 = vector.broadcast %c0_i32_16 : i32 to vector<8x1024xi32>
    %34 = arith.cmpi eq, %32, %33 : vector<8x1024xi32>
    %cst_17 = arith.constant 0.000000e+00 : f32
    %35 = vector.broadcast %cst_17 : f32 to vector<1x1024xf32>
    %36 = vector.shape_cast %31 : vector<1x1024xf32> to vector<1x1024xf32>
    %37 = vector.broadcast %36 : vector<1x1024xf32> to vector<8x1024xf32>
    %38 = vector.shape_cast %35 : vector<1x1024xf32> to vector<1x1024xf32>
    %39 = vector.broadcast %38 : vector<1x1024xf32> to vector<8x1024xf32>
    %40 = arith.select %34, %37, %39 : vector<8x1024xi1>, vector<8x1024xf32>
    %41 = arith.addf %29, %40 : vector<8x1024xf32>
    %c1_18 = arith.constant 1 : index
    %c0_19 = arith.constant 0 : index
    %c0_20 = arith.constant 0 : index
    %42 = vector.load %arg4[%c1_18, %c0_19, %c0_20] : memref<3x8x1024xf32, #tpu.memory_space<vmem>>, vector<1x8x1024xf32>
    %43 = vector.shape_cast %42 : vector<1x8x1024xf32> to vector<8x1024xf32>
    %44 = vector.shape_cast %41 : vector<8x1024xf32> to vector<1x8x1024xf32>
    tpu.vector_store %arg4[%c1_18, %c0_19, %c0_20], %44 {strides = array<i32>} : memref<3x8x1024xf32, #tpu.memory_space<vmem>>, vector<1x8x1024xf32>,
    %c2 = arith.constant 2 : index
    %c0_21 = arith.constant 0 : index
    %c0_22 = arith.constant 0 : index
    %45 = vector.load %arg4[%c2, %c0_21, %c0_22] : memref<3x8x1024xf32, #tpu.memory_space<vmem>>, vector<1x8x1024xf32>
    %46 = vector.shape_cast %45 : vector<1x8x1024xf32> to vector<8x1024xf32>
    %cst_23 = arith.constant dense<0.000000e+00> : vector<1024xf32>
    %47 = vector.multi_reduction <add>, %4, %cst_23 [0] : vector<2x1024xf32> to vector<1024xf32>
    %48 = vector.shape_cast %47 : vector<1024xf32> to vector<1x1024xf32>
    %49 = tpu.iota {dimensions = array<i32: 0>} : vector<8x1024xi32>
    %c0_i32_24 = arith.constant 0 : i32
    %50 = vector.broadcast %c0_i32_24 : i32 to vector<8x1024xi32>
    %51 = arith.cmpi eq, %49, %50 : vector<8x1024xi32>
    %cst_25 = arith.constant 0.000000e+00 : f32
    %52 = vector.broadcast %cst_25 : f32 to vector<1x1024xf32>
    %53 = vector.shape_cast %48 : vector<1x1024xf32> to vector<1x1024xf32>
    %54 = vector.broadcast %53 : vector<1x1024xf32> to vector<8x1024xf32>
    %55 = vector.shape_cast %52 : vector<1x1024xf32> to vector<1x1024xf32>
    %56 = vector.broadcast %55 : vector<1x1024xf32> to vector<8x1024xf32>
    %57 = arith.select %51, %54, %56 : vector<8x1024xi1>, vector<8x1024xf32>
    %58 = arith.addf %46, %57 : vector<8x1024xf32>
    %c2_26 = arith.constant 2 : index
    %c0_27 = arith.constant 0 : index
    %c0_28 = arith.constant 0 : index
    %59 = vector.load %arg4[%c2_26, %c0_27, %c0_28] : memref<3x8x1024xf32, #tpu.memory_space<vmem>>, vector<1x8x1024xf32>
    %60 = vector.shape_cast %59 : vector<1x8x1024xf32> to vector<8x1024xf32>
    %61 = vector.shape_cast %58 : vector<8x1024xf32> to vector<1x8x1024xf32>
    tpu.vector_store %arg4[%c2_26, %c0_27, %c0_28], %61 {strides = array<i32>} : memref<3x8x1024xf32, #tpu.memory_space<vmem>>, vector<1x8x1024xf32>,
    %c0_i32_29 = arith.constant 0 : i32
    %62 = arith.cmpi eq, %arg0, %c0_i32_29 : i32
    %63 = arith.extui %62 : i1 to i32
    %c0_i32_30 = arith.constant 0 : i32
    %64 = arith.cmpi ne, %63, %c0_i32_30 : i32
    scf.if %64 {
      %c0_31 = arith.constant 0 : index
      %c0_32 = arith.constant 0 : index
      %c0_33 = arith.constant 0 : index
      %65 = vector.load %arg4[%c0_31, %c0_32, %c0_33] : memref<3x8x1024xf32, #tpu.memory_space<vmem>>, vector<1x8x1024xf32>
      %66 = vector.shape_cast %65 : vector<1x8x1024xf32> to vector<8x1024xf32>
      %67 = vector.shape_cast %66 : vector<8x1024xf32> to vector<1x8x1024xf32>
      %cst_34 = arith.constant dense<0.000000e+00> : vector<1xf32>
      %68 = vector.multi_reduction <add>, %67, %cst_34 [1, 2] : vector<1x8x1024xf32> to vector<1xf32>
      %69 = vector.shape_cast %68 : vector<1xf32> to vector<1x1x1xf32>
      %70 = vector.extract %69[0, 0, 0] : f32 from vector<1x1x1xf32>
      %c1_35 = arith.constant 1 : index
      %c0_36 = arith.constant 0 : index
      %c0_37 = arith.constant 0 : index
      %71 = vector.load %arg4[%c1_35, %c0_36, %c0_37] : memref<3x8x1024xf32, #tpu.memory_space<vmem>>, vector<1x8x1024xf32>
      %72 = vector.shape_cast %71 : vector<1x8x1024xf32> to vector<8x1024xf32>
      %73 = vector.shape_cast %72 : vector<8x1024xf32> to vector<1x8x1024xf32>
      %cst_38 = arith.constant dense<0.000000e+00> : vector<1xf32>
      %74 = vector.multi_reduction <add>, %73, %cst_38 [1, 2] : vector<1x8x1024xf32> to vector<1xf32>
      %75 = vector.shape_cast %74 : vector<1xf32> to vector<1x1x1xf32>
      %76 = vector.extract %75[0, 0, 0] : f32 from vector<1x1x1xf32>
      %c2_39 = arith.constant 2 : index
      %c0_40 = arith.constant 0 : index
      %c0_41 = arith.constant 0 : index
      %77 = vector.load %arg4[%c2_39, %c0_40, %c0_41] : memref<3x8x1024xf32, #tpu.memory_space<vmem>>, vector<1x8x1024xf32>
      %78 = vector.shape_cast %77 : vector<1x8x1024xf32> to vector<8x1024xf32>
      %79 = vector.shape_cast %78 : vector<8x1024xf32> to vector<1x8x1024xf32>
      %cst_42 = arith.constant dense<0.000000e+00> : vector<1xf32>
      %80 = vector.multi_reduction <add>, %79, %cst_42 [1, 2] : vector<1x8x1024xf32> to vector<1xf32>
      %81 = vector.shape_cast %80 : vector<1xf32> to vector<1x1x1xf32>
      %82 = vector.extract %81[0, 0, 0] : f32 from vector<1x1x1xf32>
      %83 = arith.addf %76, %82 : f32
      %cst_43 = arith.constant 2.000000e+00 : f32
      %84 = arith.mulf %cst_43, %70 : f32
      %cst_44 = arith.constant 1.000000e+00 : f32
      %85 = arith.addf %84, %cst_44 : f32
      %cst_45 = arith.constant 1.000000e+00 : f32
      %86 = arith.addf %83, %cst_45 : f32
      %87 = arith.divf %85, %86 : f32
      %cst_46 = arith.constant 1.000000e+00 : f32
      %88 = arith.subf %cst_46, %87 : f32
      %c0_47 = arith.constant 0 : index
      %c0_48 = arith.constant 0 : index
      %89 = memref.load %arg3[%c0_47, %c0_48] : memref<1x1xf32, #tpu.memory_space<smem>>
      memref.store %88, %arg3[%c0_47, %c0_48] : memref<1x1xf32, #tpu.memory_space<smem>>
    } else {
    }
    return
  }
  func.func @transform_0(%arg0: i32) -> (i32, i32) {
    %c0_i32 = arith.constant 0 : i32
    %c0_i32_0 = arith.constant 0 : i32
    return %arg0, %c0_i32 : i32, i32
  }
  func.func @transform_1(%arg0: i32) -> (i32, i32) {
    %c0_i32 = arith.constant 0 : i32
    %c0_i32_0 = arith.constant 0 : i32
    return %arg0, %c0_i32 : i32, i32
  }
  func.func @transform_2(%arg0: i32) -> (i32, i32) {
    %c0_i32 = arith.constant 0 : i32
    %c0_i32_0 = arith.constant 0 : i32
    %c0_i32_1 = arith.constant 0 : i32
    return %c0_i32, %c0_i32_0 : i32, i32
  }
}

</mosaic_0001>

<bundles_post_ra>
// kernel: tpu_custom_call.1
= control target key start
LH: loop header
LB: loop body
LE: loop exit
PB: predicated region body
PF: predicated region fallthrough
CT: control target
= control target key end

     0   :  { %7 = vsyncpa [#allocation4], 0  ;;  %s855_s0 = inlined_call_operand.hbm [shape: f32[2,1024], index: 0, kind: input, shape index: {}]   ;;  %s856_s1 = inlined_call_operand.hbm [shape: f32[2,1024], index: 1, kind: input, shape index: {}]   ;;  %s857_s2 = inlined_call_operand.hbm [shape: f32[1,1], index: 2, kind: output, shape index: {}]  }
   0x1   :  { %8 = vsyncpa [#allocation7], 0 }
   0x2   :  { %9 = vsyncpa [#allocation5], 0  ;;  %s671_s9 = smov [#allocation3]   ;;  %s672_s11 = smov [#allocation6]  }
   0x3   :  { %s16_s10 = sshll.u32 %s671_s9, 4  ;;  %s26_s12 = sshll.u32 %s672_s11, 4  ;;  %s17_s10 = int_to_ptr.vmem [resolvable:$true] %s16_s10  ;;  %s27_s12 = int_to_ptr.vmem [resolvable:$true] %s26_s12 }
   0x4   :  { %s611_s15 = scalar_lea.hbm %s855_s0, 256 }
   0x5   :  { %p612_p0 = scmp.ne.s32.totalorder %s855_s0, %s611_s15  ;;  %p615_p1 = scmp.lt.u32.totalorder %s611_s15, %s855_s0 }
   0x7   :  { %p617_p2 = pnand %p615_p1, %p612_p0 }
   0x9   :  { %620 = shalt.err (!%p617_p2)
}
   0xa   :  { %s621_s20 = scalar_lea.vmem %s17_s10, 256  ;;  %p626_p4 = scmp.lt.s32.totalorder %s17_s10, %s17_s10 }
   0xb   :  { %p622_p3 = scmp.ne.s32.totalorder %s17_s10, %s621_s20  ;;  %p627_p5 = scmp.lt.s32.totalorder %s621_s20, %s621_s20 }
   0xd   :  { %p628_p6 = por %p627_p5, %p626_p4 }
   0xf   :  { %p629_p7 = pnand %p628_p6, %p622_p3 }
  0x11   :  { %632 = shalt.err (!%p629_p7)
}
  0x12   :  { %19 = dma.hbm_to_vmem [thread:$0]  %s855_s0, 256, %s17_s10, [#allocation4]  }
  0x13   :  { %s633_s25 = scalar_lea.hbm %s856_s1, 256 }
  0x14   :  { %p634_p8 = scmp.ne.s32.totalorder %s856_s1, %s633_s25  ;;  %p637_p9 = scmp.lt.u32.totalorder %s633_s25, %s856_s1 }
  0x16   :  { %p639_p10 = pnand %p637_p9, %p634_p8 }
  0x18   :  { %642 = shalt.err (!%p639_p10)
}
  0x19   :  { %s643_s30 = scalar_lea.vmem %s27_s12, 256  ;;  %p648_p12 = scmp.lt.s32.totalorder %s27_s12, %s27_s12 }
  0x1a   :  { %p644_p11 = scmp.ne.s32.totalorder %s27_s12, %s643_s30  ;;  %p649_p13 = scmp.lt.s32.totalorder %s643_s30, %s643_s30 }
  0x1c   :  { %p650_p0 = por %p649_p13, %p648_p12 }
  0x1e   :  { %p651_p1 = pnand %p650_p0, %p644_p11 }
  0x20   :  { %654 = shalt.err (!%p651_p1)
}
  0x21   :  { %29 = dma.hbm_to_vmem [thread:$0]  %s856_s1, 256, %s27_s12, [#allocation7]  }
  0x22   :  { %665 = dma.done.wait [#allocation4], 256  }
  0x23   :  { %666 = vsyncadd [#allocation4], 4294967040 }
  0x24   :  { %667 = dma.done.wait [#allocation7], 256  }
  0x25   :  { %668 = vsyncadd [#allocation7], 4294967040  ;;  %v96_v0 = vlaneseq  ;;  %v673_v1 = vmov 1983009808   ;;  %v719_v6 = vld [vmem:[#allocation6] sm:$0xff]  ;;  %v721_v7 = vld [vmem:[#allocation6 + $0x8] sm:$0xff] }
  0x26   :  { %v94_v2 = vunpack.c.l.s4 %v673_v1  ;;  %vm134_vm0 = vcmask 1041408   ;;  %v64_v8 = vld [vmem:[#allocation3] sm:$0xff]  ;;  %v362_v9 = vcombine.high %v719_v6, %v719_v6  ;;  %v379_v11 = vcombine.high %v721_v7, %v721_v7  ;;  %v65_v56 = vld [vmem:[#allocation3 + $0x8] sm:$0xff]  ;;  %s655_s15 = scalar_lea.hbm %s857_s2, 16 }
  0x27   :  { %v714_v3 = vshrl.u32 %v96_v0, 7  ;;  %v585_v13 = vmul.f32 -1.442695, %v64_v8  ;;  %p656_p2 = scmp.ne.s32.totalorder %s857_s2, %s655_s15  ;;  %p659_p3 = scmp.lt.u32.totalorder %s655_s15, %s857_s2 }
  0x28   :  { %v95_v4 = vunpack.c.0.s8 %v94_v2 }
  0x29   :  { %601 = vpow2.f32 %v585_v13  ;;  %vm193_vm1 = vcmp.eq.s32.totalorder %v714_v3, 0  ;;  %p661_p4 = pnand %p659_p3, %p656_p2 }
  0x2a   :  { %v717_v5 = vsub.s32 %v95_v4, %v714_v3 }
  0x2c   :  { %v369_v10 = vrot.slane %v719_v6, %v717_v5  ;;  %v386_v12 = vrot.slane %v721_v7, %v717_v5  ;;  %v376_v14 = vrot.slane %v362_v9, %v717_v5  ;;  %v393_v16 = vrot.slane %v379_v11, %v717_v5 }
  0x2d   :  { %v586_v9 = vmul.f32 -1.442695, %v65_v56 }
  0x2e   :  { %v377_v15 = vcombine.high %v369_v10, %v369_v10  ;;  %v394_v17 = vcombine.high %v386_v12, %v386_v12  ;;  %v404_v18 = vsel %vm134_vm0, %v369_v10, 0.0  ;;  %v432_v19 = vsel %vm134_vm0, %v386_v12, 0.0 }
  0x2f   :  { %v378_v20 = vcombine.high %v376_v14, %v376_v14  ;;  %v395_v21 = vcombine.high %v393_v16, %v393_v16  ;;  %v405_v22 = vrot.slane %v404_v18, 4  ;;  %v418_v25 = vsel %vm134_vm0, %v376_v14, 0.0 }
  0x30   :  { %v411_v23 = vsel %vm134_vm0, %v377_v15, 0.0  ;;  %v433_v26 = vrot.slane %v432_v19, 4  ;;  %v439_v27 = vsel %vm134_vm0, %v394_v17, 0.0  ;;  %v419_v29 = vrot.slane %v418_v25, 4 }
  0x31   :  { %v412_v24 = vrot.slane %v411_v23, 4  ;;  %v406_v28 = vadd.f32 %v405_v22, %v404_v18  ;;  %v425_v30 = vsel %vm134_vm0, %v378_v20, 0.0  ;;  %v440_v31 = vrot.slane %v439_v27, 4 }
  0x32   :  { %v426_v33 = vrot.slane %v425_v30, 4  ;;  %v434_v34 = vadd.f32 %v433_v26, %v432_v19  ;;  %v446_v35 = vsel %vm134_vm0, %v393_v16, 0.0  ;;  %v420_v37 = vadd.f32 %v419_v29, %v418_v25 }
  0x33   :  { %v413_v32 = vadd.f32 %v412_v24, %v411_v23  ;;  %v407_v36 = vrot.slane %v406_v28, 2  ;;  %v441_v38 = vadd.f32 %v440_v31, %v439_v27  ;;  %v447_v39 = vrot.slane %v446_v35, 4  ;;  %v602_v57 = vpop.eup %601 }
  0x34   :  { %v427_v41 = vadd.f32 %v426_v33, %v425_v30  ;;  %v435_v42 = vrot.slane %v434_v34, 2  ;;  %v453_v43 = vsel %vm134_vm0, %v395_v21, 0.0  ;;  %v421_v45 = vrot.slane %v420_v37, 2 }
  0x35   :  { %v414_v40 = vrot.slane %v413_v32, 2  ;;  %v408_v44 = vadd.f32 %v407_v36, %v406_v28  ;;  %v442_v46 = vrot.slane %v441_v38, 2  ;;  %v448_v47 = vadd.f32 %v447_v39, %v446_v35 }
  0x36   :  { %v428_v49 = vrot.slane %v427_v41, 2  ;;  %v436_v50 = vadd.f32 %v435_v42, %v434_v34  ;;  %v454_v51 = vrot.slane %v453_v43, 4  ;;  %v422_v53 = vadd.f32 %v421_v45, %v420_v37 }
  0x37   :  { %v415_v48 = vadd.f32 %v414_v40, %v413_v32  ;;  %v409_v52 = vrot.slane %v408_v44, 1  ;;  %v443_v54 = vadd.f32 %v442_v46, %v441_v38  ;;  %v449_v55 = vrot.slane %v448_v47, 2 }
  0x38   :  { %v429_v59 = vadd.f32 %v428_v49, %v427_v41  ;;  %v437_v60 = vrot.slane %v436_v50, 1  ;;  %v455_v61 = vadd.f32 %v454_v51, %v453_v43  ;;  %v423_v63 = vrot.slane %v422_v53, 1 }
  0x39   :  { %v416_v58 = vrot.slane %v415_v48, 1  ;;  %v410_v62 = vadd.f32 %v409_v52, %v408_v44  ;;  %v444_v0 = vrot.slane %v443_v54, 1  ;;  %v450_v1 = vadd.f32 %v449_v55, %v448_v47 }
  0x3a   :  { %v430_v4 = vrot.slane %v429_v59, 1  ;;  %v456_v8 = vrot.slane %v455_v61, 2  ;;  %v424_v10 = vadd.f32 %v423_v63, %v422_v53  ;;  %v438_v11 = vadd.f32 %v437_v60, %v436_v50 }
  0x3b   :  { %v417_v2 = vadd.f32 %v416_v58, %v415_v48  ;;  %v460_v12 = vsel %vm193_vm1, %v410_v62, 0.0  ;;  %v451_v14 = vrot.slane %v450_v1, 1  ;;  %v445_v17 = vadd.f32 %v444_v0, %v443_v54 }
  0x3c   :  { %v431_v13 = vadd.f32 %v430_v4, %v429_v59  ;;  %v457_v15 = vadd.f32 %v456_v8, %v455_v61  ;;  %v462_v18 = vsel %vm193_vm1, %v424_v10, 0.0  ;;  %603 = vpow2.f32 %v586_v9 }
  0x3d   :  { %v461_v16 = vsel %vm193_vm1, %v417_v2, 0.0  ;;  %v74_v22 = vadd.f32 1.0, %v602_v57  ;;  %v452_v24 = vadd.f32 %v451_v14, %v450_v1  ;;  %v464_v25 = vsel %vm193_vm1, %v438_v11, 0.0 }
  0x3e   :  { %v543_v19 = vadd.f32 %v461_v16, %v460_v12  ;;  %v458_v20 = vrot.slane %v457_v15, 1  ;;  %v463_v21 = vsel %vm193_vm1, %v431_v13, 0.0  ;;  %v465_v28 = vsel %vm193_vm1, %v445_v17, 0.0 }
  0x3f   :  { %605 = vrcp.f32 %v74_v22  ;;  %v466_v30 = vsel %vm193_vm1, %v452_v24, 0.0 }
  0x40   :  { %v544_v23 = vadd.f32 %v543_v19, %v462_v18  ;;  %v459_v27 = vadd.f32 %v458_v20, %v457_v15 }
  0x42   :  { %v545_v26 = vadd.f32 %v544_v23, %v463_v21  ;;  %v467_v32 = vsel %vm193_vm1, %v459_v27, 0.0 }
  0x44   :  { %v546_v29 = vadd.f32 %v545_v26, %v464_v25 }
  0x46   :  { %v547_v31 = vadd.f32 %v546_v29, %v465_v28  ;;  %v604_v34 = vpop.eup %603 }
  0x47   :  { %v75_v36 = vadd.f32 1.0, %v604_v34 }
  0x48   :  { %v548_v33 = vadd.f32 %v547_v31, %v466_v30 }
  0x49   :  { %v606_v37 = vpop.eup %605  ;;  %607 = vrcp.f32 %v75_v36 }
  0x4a   :  { %v549_v35 = vadd.f32 %v548_v33, %v467_v32  ;;  %v80_v38 = vmul.f32 %v606_v37, %v719_v6  ;;  %v229_v39 = vcombine.high %v606_v37, %v606_v37  ;;  %v236_v40 = vrot.slane %v606_v37, %v717_v5 }
  0x4c   :  { %550 = vadd.xlane.f32.xlu1 %v549_v35  ;;  %v92_v41 = vcombine.high %v80_v38, %v80_v38  ;;  %v99_v42 = vrot.slane %v80_v38, %v717_v5  ;;  %v243_v43 = vrot.slane %v229_v39, %v717_v5  ;;  %v244_v44 = vcombine.high %v236_v40, %v236_v40 }
  0x4d   :  { %v271_v45 = vsel %vm134_vm0, %v236_v40, 0.0 }
  0x4e   :  { %v106_v46 = vrot.slane %v92_v41, %v717_v5  ;;  %v107_v47 = vcombine.high %v99_v42, %v99_v42  ;;  %v135_v48 = vsel %vm134_vm0, %v99_v42, 0.0  ;;  %v245_v49 = vcombine.high %v243_v43, %v243_v43 }
  0x4f   :  { %v136_v50 = vrot.slane %v135_v48, 4  ;;  %v272_v51 = vrot.slane %v271_v45, 4  ;;  %v278_v6 = vsel %vm134_vm0, %v244_v44, 0.0  ;;  %v285_v52 = vsel %vm134_vm0, %v243_v43, 0.0 }
  0x50   :  { %v108_v53 = vcombine.high %v106_v46, %v106_v46  ;;  %v142_v54 = vsel %vm134_vm0, %v107_v47, 0.0  ;;  %v149_v55 = vsel %vm134_vm0, %v106_v46, 0.0  ;;  %v279_v56 = vrot.slane %v278_v6, 4 }
  0x51   :  { %v137_v57 = vadd.f32 %v136_v50, %v135_v48  ;;  %v143_v58 = vrot.slane %v142_v54, 4  ;;  %v150_v59 = vrot.slane %v149_v55, 4  ;;  %v273_v60 = vadd.f32 %v272_v51, %v271_v45 }
  0x52   :  { %v156_v61 = vsel %vm134_vm0, %v108_v53, 0.0  ;;  %v770_v62 = vadd.f32 %v279_v56, %v278_v6  ;;  %v286_v63 = vrot.slane %v285_v52, 4  ;;  %v773_v0 = vsel %vm134_vm0, %v245_v49, 0.0 }
  0x53   :  { %v138_v1 = vrot.slane %v137_v57, 2  ;;  %v144_v2 = vadd.f32 %v143_v58, %v142_v54  ;;  %v151_v4 = vadd.f32 %v150_v59, %v149_v55  ;;  %v157_v8 = vrot.slane %v156_v61, 4  ;;  %v608_v9 = vpop.eup %607 }
  0x54   :  { %v274_v10 = vrot.slane %v273_v60, 2  ;;  %v281_v11 = vrot.slane %v770_v62, 2  ;;  %v776_v12 = vadd.f32 %v286_v63, %v285_v52  ;;  %v293_v13 = vrot.slane %v773_v0, 4 }
  0x55   :  { %v81_v14 = vmul.f32 %v608_v9, %v721_v7  ;;  %v139_v15 = vadd.f32 %v138_v1, %v137_v57  ;;  %v145_v16 = vrot.slane %v144_v2, 2  ;;  %v152_v17 = vrot.slane %v151_v4, 2 }
  0x56   :  { %v158_v18 = vadd.f32 %v157_v8, %v156_v61  ;;  %v246_v19 = vcombine.high %v608_v9, %v608_v9  ;;  %v781_v20 = vrot.slane %v608_v9, %v717_v5  ;;  %v275_v21 = vadd.f32 %v274_v10, %v273_v60 }
  0x57   :  { %v109_v22 = vcombine.high %v81_v14, %v81_v14  ;;  %v116_v23 = vrot.slane %v81_v14, %v717_v5  ;;  %v140_v24 = vrot.slane %v139_v15, 1  ;;  %v146_v25 = vadd.f32 %v145_v16, %v144_v2 }
  0x58   :  { %v153_v26 = vadd.f32 %v152_v17, %v151_v4  ;;  %v159_v27 = vrot.slane %v158_v18, 2  ;;  %v785_v28 = vrot.slane %v246_v19, %v717_v5  ;;  %v261_v7 = vcombine.high %v781_v20, %v781_v20 }
  0x59   :  { %v123_v29 = vrot.slane %v109_v22, %v717_v5  ;;  %v124_v30 = vcombine.high %v116_v23, %v116_v23  ;;  %v141_v31 = vadd.f32 %v140_v24, %v139_v15  ;;  %v147_v32 = vrot.slane %v146_v25, 1 }
  0x5a   :  { %v154_v33 = vrot.slane %v153_v26, 1  ;;  %v160_v34 = vadd.f32 %v159_v27, %v158_v18  ;;  %v163_v35 = vsel %vm134_vm0, %v116_v23, 0.0  ;;  %v262_v36 = vcombine.high %v785_v28, %v785_v28 }
  0x5b   :  { %v125_v37 = vcombine.high %v123_v29, %v123_v29  ;;  %v148_v38 = vadd.f32 %v147_v32, %v146_v25  ;;  %v164_v39 = vrot.slane %v163_v35, 4  ;;  %v170_v40 = vsel %vm134_vm0, %v124_v30, 0.0 }
  0x5c   :  { %v155_v41 = vadd.f32 %v154_v33, %v153_v26  ;;  %v161_v42 = vrot.slane %v160_v34, 1  ;;  %v171_v43 = vrot.slane %v170_v40, 4  ;;  %v177_v5 = vsel %vm134_vm0, %v123_v29, 0.0 }
  0x5d   :  { %v165_v44 = vadd.f32 %v164_v39, %v163_v35  ;;  %v178_v45 = vrot.slane %v177_v5, 4  ;;  %v184_v46 = vsel %vm134_vm0, %v125_v37, 0.0  ;;  %v194_v47 = vsel %vm193_vm1, %v141_v31, 0.0 }
  0x5e   :  { %v162_v48 = vadd.f32 %v161_v42, %v160_v34  ;;  %v172_v49 = vadd.f32 %v171_v43, %v170_v40  ;;  %v185_v50 = vrot.slane %v184_v46, 4  ;;  %v195_v51 = vsel %vm193_vm1, %v148_v38, 0.0 }
  0x5f   :  { %v166_v6 = vrot.slane %v165_v44, 2  ;;  %v179_v52 = vadd.f32 %v178_v45, %v177_v5  ;;  %v196_v53 = vsel %vm193_vm1, %v155_v41, 0.0  ;;  %v495_v54 = vadd.f32 %v195_v51, %v194_v47 }
  0x60   :  { %v173_v55 = vrot.slane %v172_v49, 2  ;;  %v186_v56 = vadd.f32 %v185_v50, %v184_v46  ;;  %v197_v57 = vsel %vm193_vm1, %v162_v48, 0.0  ;;  %v276_v58 = vrot.slane %v275_v21, 1 }
  0x61   :  { %v167_v59 = vadd.f32 %v166_v6, %v165_v44  ;;  %v180_v60 = vrot.slane %v179_v52, 2  ;;  %v496_v61 = vadd.f32 %v495_v54, %v196_v53  ;;  %v282_v63 = vadd.f32 %v281_v11, %v770_v62 }
  0x62   :  { %v174_v1 = vadd.f32 %v173_v55, %v172_v49  ;;  %v187_v2 = vrot.slane %v186_v56, 2  ;;  %v277_v4 = vadd.f32 %v276_v58, %v275_v21  ;;  %v288_v8 = vrot.slane %v776_v12, 2 }
  0x63   :  { %v168_v9 = vrot.slane %v167_v59, 1  ;;  %v181_v10 = vadd.f32 %v180_v60, %v179_v52  ;;  %v497_v14 = vadd.f32 %v496_v61, %v197_v57  ;;  %v283_v15 = vrot.slane %v282_v63, 1 }
  0x64   :  { %v175_v16 = vrot.slane %v174_v1, 1  ;;  %v188_v17 = vadd.f32 %v187_v2, %v186_v56  ;;  %v289_v18 = vadd.f32 %v288_v8, %v776_v12  ;;  %v294_v19 = vadd.f32 %v293_v13, %v773_v0 }
  0x65   :  { %v169_v22 = vadd.f32 %v168_v9, %v167_v59  ;;  %v182_v23 = vrot.slane %v181_v10, 1  ;;  %v284_v62 = vadd.f32 %v283_v15, %v282_v63  ;;  %v299_v11 = vsel %vm134_vm0, %v781_v20, 0.0 }
  0x66   :  { %v176_v21 = vadd.f32 %v175_v16, %v174_v1  ;;  %v189_v24 = vrot.slane %v188_v17, 1  ;;  %v290_v25 = vrot.slane %v289_v18, 1  ;;  %v295_v26 = vrot.slane %v294_v19, 2 }
  0x67   :  { %v183_v27 = vadd.f32 %v182_v23, %v181_v10  ;;  %v198_v29 = vsel %vm193_vm1, %v169_v22, 0.0  ;;  %v300_v30 = vrot.slane %v299_v11, 4  ;;  %v306_v12 = vsel %vm134_vm0, %v261_v7, 0.0 }
  0x68   :  { %v190_v31 = vadd.f32 %v189_v24, %v188_v17  ;;  %v199_v0 = vsel %vm193_vm1, %v176_v21, 0.0  ;;  %v498_v13 = vadd.f32 %v497_v14, %v198_v29  ;;  %v291_v32 = vadd.f32 %v290_v25, %v289_v18 }
  0x69   :  { %v200_v20 = vsel %vm193_vm1, %v183_v27, 0.0  ;;  %v296_v33 = vadd.f32 %v295_v26, %v294_v19  ;;  %v301_v34 = vadd.f32 %v300_v30, %v299_v11  ;;  %v307_v35 = vrot.slane %v306_v12, 4 }
  0x6a   :  { %v201_v37 = vsel %vm193_vm1, %v190_v31, 0.0  ;;  %v499_v38 = vadd.f32 %v498_v13, %v199_v0  ;;  %v313_v39 = vsel %vm134_vm0, %v785_v28, 0.0  ;;  %v320_v7 = vsel %vm134_vm0, %v262_v36, 0.0 }
  0x6b   :  { %v297_v40 = vrot.slane %v296_v33, 1  ;;  %v302_v41 = vrot.slane %v301_v34, 2  ;;  %v308_v42 = vadd.f32 %v307_v35, %v306_v12  ;;  %v314_v43 = vrot.slane %v313_v39, 4 }
  0x6c   :  { %v500_v5 = vadd.f32 %v499_v38, %v200_v20  ;;  %v321_v44 = vrot.slane %v320_v7, 4  ;;  %v327_v45 = vsel %vm193_vm1, %v277_v4, 0.0  ;;  %v328_v46 = vsel %vm193_vm1, %v284_v62, 0.0 }
  0x6d   :  { %v298_v47 = vadd.f32 %v297_v40, %v296_v33  ;;  %v303_v48 = vadd.f32 %v302_v41, %v301_v34  ;;  %v309_v49 = vrot.slane %v308_v42, 2  ;;  %v315_v50 = vadd.f32 %v314_v43, %v313_v39 }
  0x6e   :  { %v501_v51 = vadd.f32 %v500_v5, %v201_v37  ;;  %v322_v28 = vadd.f32 %v321_v44, %v320_v7  ;;  %v329_v36 = vsel %vm193_vm1, %v291_v32, 0.0  ;;  %v519_v6 = vadd.f32 %v328_v46, %v327_v45 }
  0x6f   :  { %v304_v52 = vrot.slane %v303_v48, 1  ;;  %v310_v53 = vadd.f32 %v309_v49, %v308_v42  ;;  %v316_v54 = vrot.slane %v315_v50, 2  ;;  %v330_v55 = vsel %vm193_vm1, %v298_v47, 0.0 }
  0x70   :  { %502 = vadd.xlane.f32.xlu0 %v501_v51  ;;  %v323_v56 = vrot.slane %v322_v28, 2  ;;  %v520_v57 = vadd.f32 %v519_v6, %v329_v36 }
  0x71   :  { %v305_v58 = vadd.f32 %v304_v52, %v303_v48  ;;  %v311_v59 = vrot.slane %v310_v53, 1  ;;  %v317_v60 = vadd.f32 %v316_v54, %v315_v50 }
  0x72   :  { %v324_v61 = vadd.f32 %v323_v56, %v322_v28  ;;  %v521_v63 = vadd.f32 %v520_v57, %v330_v55 }
  0x73   :  { %v312_v1 = vadd.f32 %v311_v59, %v310_v53  ;;  %v318_v2 = vrot.slane %v317_v60, 1  ;;  %v331_v4 = vsel %vm193_vm1, %v305_v58, 0.0 }
  0x74   :  { %v325_v8 = vrot.slane %v324_v61, 1  ;;  %v522_v9 = vadd.f32 %v521_v63, %v331_v4 }
  0x75   :  { %v319_v10 = vadd.f32 %v318_v2, %v317_v60  ;;  %v332_v14 = vsel %vm193_vm1, %v312_v1, 0.0 }
  0x76   :  { %v326_v15 = vadd.f32 %v325_v8, %v324_v61  ;;  %v523_v16 = vadd.f32 %v522_v9, %v332_v14 }
  0x77   :  { %v333_v17 = vsel %vm193_vm1, %v319_v10, 0.0 }
  0x78   :  { %v334_v18 = vsel %vm193_vm1, %v326_v15, 0.0  ;;  %v524_v19 = vadd.f32 %v523_v16, %v333_v17 }
  0x7a   :  { %v525_v22 = vadd.f32 %v524_v19, %v334_v18 }
  0x7c   :  { %526 = vadd.xlane.f32.xlu0 %v525_v22 }
  0xd9   :  { %v551_v62 = vpop.xlane.xlu1 %550 }
  0xda   :  { %v552_v24 = vrot.slane %v551_v62, 4 }
  0xdc   :  { %v553_v27 = vadd.f32 %v552_v24, %v551_v62 }
  0xde   :  { %v554_v12 = vrot.slane %v553_v27, 2 }
  0xe0   :  { %v555_v3 = vadd.f32 %v554_v12, %v553_v27 }
  0xe2   :  { %v556_v33 = vrot.slane %v555_v3, 1 }
  0xe4   :  { %v557_v37 = vadd.f32 %v556_v33, %v555_v3 }
  0xfd   :  { %v503_v23 = vpop.xlane.xlu0 %502 }
  0xfe   :  { %v504_v11 = vrot.slane %v503_v23, 4 }
 0x100   :  { %v505_v21 = vadd.f32 %v504_v11, %v503_v23 }
 0x102   :  { %v506_v25 = vrot.slane %v505_v21, 2 }
 0x104   :  { %v507_v26 = vadd.f32 %v506_v25, %v505_v21 }
 0x106   :  { %v508_v29 = vrot.slane %v507_v26, 1 }
 0x108   :  { %v509_v30 = vadd.f32 %v508_v29, %v507_v26 }
 0x109   :  { %v527_v31 = vpop.xlane.xlu0 %526 }
 0x10a   :  { %v528_v0 = vrot.slane %v527_v31, 4  ;;  %587 = vpush %v509_v30 }
 0x10c   :  { %v529_v13 = vadd.f32 %v528_v0, %v527_v31 }
 0x10e   :  { %v530_v32 = vrot.slane %v529_v13, 2 }
 0x110   :  { %v531_v20 = vadd.f32 %v530_v32, %v529_v13 }
 0x112   :  { %v532_v34 = vrot.slane %v531_v20, 1 }
 0x114   :  { %v533_v35 = vadd.f32 %v532_v34, %v531_v20 }
 0x116   :  { %589 = vpush %v533_v35 }
 0x117   :  { %591 = vpush %v557_v37 }
 0x13b   :  { %s588_s1 = spop %587 }
 0x13c   :  { %s560_s8 = smul.f32 2.0, %s588_s1 }
 0x13e   :  { %s561_s9 = sadd.f32 1.0, %s560_s8 }
 0x147   :  { %s590_s4 = spop %589 }
 0x148   :  { %s592_s5 = spop %591 }
 0x149   :  { %s559_s6 = sadd.f32 %s592_s5, %s590_s4 }
 0x14b   :  { %s562_s7 = sadd.f32 1.0, %s559_s6 }
 0x14d   :  { %v563_v38 = vstv %s562_s7 }
 0x14e   :  { %609 = vrcp.f32 %v563_v38 }
 0x158   :  { %v610_v39 = vpop.eup %609 }
 0x159   :  { %593 = vpush %v610_v39 }
 0x18a   :  { %s594_s10 = spop %593 }
 0x18b   :  { %s566_s11 = smul.f32 %s594_s10, %s561_s9 }
 0x18d   :  { %s567_s12 = ssub.f32 1.0, %s566_s11 }
 0x18f   :  { %569 = sst [smem:[#allocation8]] %s567_s12 }
 0x190   :  { %664 = shalt.err (!%p661_p4)
}
 0x191   :  { %s674_s20 = smov [#allocation8]  }
 0x192   :  { %577 = dma.smem_to_hbm %s674_s20, 16, %s857_s2, [#allocation5]  }
 0x193   :  { %669 = dma.done.wait [#allocation5], 16  }
 0x194   :  { %670 = vsyncadd [#allocation5], 4294967280 }
 0x195   :  { %581 = sfence }
 0x196   :  { %582 = vsyncpa [#allocation4], 1 }
 0x197   :  { %583 = vsyncpa [#allocation7], 1 }
 0x198   :  { %584 = vsyncpa [#allocation5], 1 }

</bundles_post_ra>
